<compile_context>
chip_gen: v6e
topology: v6e:2x2x1
jax: 0.10.0
libtpu: 0.0.40
codegen_flags: <defaults>
</compile_context>

<pallas_src>
import functools

import jax
import jax.numpy as jnp
from jax.experimental import pallas as pl
from jax.experimental.pallas import tpu as pltpu


# ----------------------------------------------------------------------------
# helpers
# ----------------------------------------------------------------------------
def _round_up(x, m):
    return ((x + m - 1) // m) * m


def _cdiv(a, b):
    return (a + b - 1) // b


def _apply_act(acc, act, slope):
    if act == "leaky":
        return jnp.where(acc >= 0.0, acc, slope * acc)
    if act == "relu":
        return jnp.maximum(acc, 0.0)
    if act == "tanh":
        return jnp.tanh(acc)
    return acc


# ----------------------------------------------------------------------------
# Pallas kernels: (phase-batched) matmul + fused bias/activation epilogue
# ----------------------------------------------------------------------------
def _mm_bias_act_1k_kernel(a_ref, b_ref, bias_ref, o_ref, *, act, slope):
    # Single-K fast path: no accumulator scratch, one MXU pass + epilogue.
    acc = jnp.dot(a_ref[...], b_ref[...], preferred_element_type=jnp.float32)
    acc = acc + bias_ref[...]                        # (1, tn) broadcasts over tm
    o_ref[...] = _apply_act(acc, act, slope).astype(o_ref.dtype)


def _mm_bias_act_acc_kernel(a_ref, b_ref, bias_ref, o_ref, acc_ref, *, act, slope):
    # General path: K-axis accumulation in f32 VMEM scratch.
    kk = pl.program_id(3)

    @pl.when(kk == 0)
    def _init():
        acc_ref[...] = jnp.zeros_like(acc_ref)

    acc_ref[...] += jnp.dot(a_ref[...], b_ref[...],
                            preferred_element_type=jnp.float32)

    @pl.when(kk == pl.num_programs(3) - 1)
    def _epilogue():
        acc = acc_ref[...] + bias_ref[...]
        o_ref[...] = _apply_act(acc, act, slope).astype(o_ref.dtype)


def _pick_tiles(P, M, Kp, Np):
    # bf16 operands: sublane granule 16, lane granule 128.  Budgeted for v7x
    # (64 MiB VMEM / 32 MiB scoped); raise tm toward 1024 on v5e/v6e at real
    # Pix2Pix sizes.
    tm = min(512, _round_up(max(M, 1), 16))
    # Make sure the parallel part of the grid has >= 2 blocks so megacore
    # (v7x, 2 TCs) sharding is not a no-op.
    if P * _cdiv(max(M, 1), tm) < 2 and M >= 32:
        tm = _round_up(_cdiv(M, 2), 16)
    tk = Kp if Kp <= 256 else (256 if Kp % 256 == 0 else 128)
    tn = Np if Np <= 256 else (256 if Np % 256 == 0 else 128)
    return tm, tk, tn


def _matmul_bias_act(patches, w_pkn, bias_1n, act, slope, out_dtype):
    """patches: (P, M, K) bf16;  w_pkn: (P, Kp, Np) bf16 pre-packed;
    bias_1n: (1, Np) f32.  Returns (P, Mp, Np) in out_dtype."""
    P, M, K = patches.shape
    Pw, Kp, Np = w_pkn.shape
    assert Pw == P and Kp >= K and Kp % 128 == 0 and Np % 128 == 0
    tm, tk, tn = _pick_tiles(P, M, Kp, Np)
    Mp = _round_up(M, tm)

    a = jnp.pad(patches, ((0, 0), (0, Mp - M), (0, Kp - K))).astype(jnp.bfloat16)

    nk = Kp // tk
    if nk == 1:
        kernel = functools.partial(_mm_bias_act_1k_kernel, act=act, slope=float(slope))
        grid = (P, Mp // tm, Np // tn)
        in_specs = [
            pl.BlockSpec((None, tm, tk), lambda p, i, j: (p, i, 0)),
            pl.BlockSpec((None, tk, tn), lambda p, i, j: (p, 0, j)),
            pl.BlockSpec((1, tn), lambda p, i, j: (0, j)),
        ]
        out_specs = pl.BlockSpec((None, tm, tn), lambda p, i, j: (p, i, j))
        scratch = ()
        semantics = ("parallel", "parallel", "parallel")
    else:
        kernel = functools.partial(_mm_bias_act_acc_kernel, act=act, slope=float(slope))
        grid = (P, Mp // tm, Np // tn, nk)
        in_specs = [
            pl.BlockSpec((None, tm, tk), lambda p, i, j, k: (p, i, k)),
            pl.BlockSpec((None, tk, tn), lambda p, i, j, k: (p, k, j)),
            pl.BlockSpec((1, tn), lambda p, i, j, k: (0, j)),
        ]
        out_specs = pl.BlockSpec((None, tm, tn), lambda p, i, j, k: (p, i, j))
        scratch = (pltpu.VMEM((tm, tn), jnp.float32),)
        semantics = ("parallel", "parallel", "parallel", "arbitrary")

    return pl.pallas_call(
        kernel,
        out_shape=jax.ShapeDtypeStruct((P, Mp, Np), out_dtype),
        grid_spec=pltpu.PrefetchScalarGridSpec(
            num_scalar_prefetch=0,
            grid=grid,
            in_specs=in_specs,
            out_specs=out_specs,
            scratch_shapes=scratch,
        ),
        compiler_params=pltpu.CompilerParams(
            dimension_semantics=semantics,
            vmem_limit_bytes=32 * 1024 * 1024),
    )(a, w_pkn, bias_1n)


# ----------------------------------------------------------------------------
# Plain-JAX glue: im2col / sub-pixel phase patches (tap-major, channel-minor)
# ----------------------------------------------------------------------------
def _im2col(x, kh, kw, stride, pad):
    N, H, W, C = x.shape
    xp = jnp.pad(x, ((0, 0), (pad, pad), (pad, pad), (0, 0)))
    OH = (H + 2 * pad - kh) // stride + 1
    OW = (W + 2 * pad - kw) // stride + 1
    cols = []
    for ki in range(kh):
        for kj in range(kw):
            cols.append(xp[:,
                           ki: ki + (OH - 1) * stride + 1: stride,
                           kj: kj + (OW - 1) * stride + 1: stride,
                           :])                       # (N, OH, OW, C)
    patches = jnp.concatenate(cols, axis=-1).reshape(N * OH * OW, kh * kw * C)
    return patches[None], (N, OH, OW)                # (1, M, K)


def _phase_geometry(k, s, pad, in_size):
    # ConvTranspose:  out[o] = sum_{i,t : i*s - pad + t == o} x[i] * w[t]
    # For phase o = br + s*mr the contributing taps are t = t0 + s*j with
    # t0 = (br+pad) % s, and the input index is i = mr + (c0 - j).
    out_size = (in_size - 1) * s - 2 * pad + k
    assert out_size % s == 0, "phase batching assumes s | out_size"
    m = out_size // s
    offs = []                                        # per-phase input offsets
    for b in range(s):
        t0 = (b + pad) % s
        c0 = (b + pad - t0) // s
        n_taps = len(range(t0, k, s))
        offs.append([c0 - j for j in range(n_taps)])
    flat = [o for per in offs for o in per]
    lo = max(0, -min(flat))
    hi = max(0, (m - 1) + max(flat) - (in_size - 1))
    return out_size, m, offs, lo, hi


def _subpixel_patches(x, kh, kw, stride, pad):
    # Sub-pixel decomposition on the UNDILATED input: one pad of x, one
    # contiguous slice per (phase, tap), all stride**2 phases stacked along a
    # leading axis so a single pallas_call covers the whole transposed conv.
    N, H, W, C = x.shape
    s = stride
    assert kh % s == 0 and kw % s == 0, "phase batching assumes stride | kernel"
    OH, Mr, offs_r, padT, padB = _phase_geometry(kh, s, pad, H)
    OW, Mc, offs_c, padL, padR = _phase_geometry(kw, s, pad, W)
    xp = jnp.pad(x, ((0, 0), (padT, padB), (padL, padR), (0, 0)))
    phases = []
    for br in range(s):
        for bc in range(s):
            cols = []
            for orr in offs_r[br]:
                for occ in offs_c[bc]:
                    cols.append(xp[:, padT + orr: padT + orr + Mr,
                                   padL + occ: padL + occ + Mc, :])
            phases.append(jnp.concatenate(cols, axis=-1).reshape(N * Mr * Mc, -1))
    return jnp.stack(phases, axis=0), (N, OH, OW, Mr, Mc)


# ----------------------------------------------------------------------------
# Layer wrappers (packed weights)
# ----------------------------------------------------------------------------
def conv2d(x, layer, n_real, k, stride, pad, *, act, slope, out_dtype):
    patches, (N, OH, OW) = _im2col(x, k, k, stride, pad)
    y = _matmul_bias_act(patches, layer["w"], layer["b"], act, slope, out_dtype)
    return y[0, :N * OH * OW, :n_real].reshape(N, OH, OW, n_real)


def conv_transpose2d(x, layer, n_real, k, stride, pad, *, act, slope, out_dtype):
    patches, (N, OH, OW, Mr, Mc) = _subpixel_patches(x, k, k, stride, pad)
    y = _matmul_bias_act(patches, layer["w"], layer["b"], act, slope, out_dtype)
    s = stride
    y = y[:, :N * Mr * Mc, :n_real].reshape(s, s, N, Mr, Mc, n_real)
    # depth-to-space: phase (br, bc) lands at output (br + s*mr, bc + s*mc)
    y = jnp.transpose(y, (2, 3, 0, 4, 1, 5)).reshape(N, OH, OW, n_real)
    return y


# ----------------------------------------------------------------------------
# Parameter init + pre-packing (pack/pad/cast once, OUTSIDE the jitted forward)
# ----------------------------------------------------------------------------
def init_pix2pix_params(key, in_channels, out_channels, hidden, kernel_size):
    k = kernel_size
    keys = jax.random.split(key, 4)
    scale = 0.05

    def w(kk, shape):
        return (scale * jax.random.normal(kk, shape)).astype(jnp.float32)

    return {
        # encoder (Conv2d: (Cout, Cin, k, k))
        "w_d1": w(keys[0], (hidden, in_channels, k, k)),
        "b_d1": jnp.zeros((hidden,), jnp.float32),
        "w_d2": w(keys[1], (2 * hidden, hidden, k, k)),
        "b_d2": jnp.zeros((2 * hidden,), jnp.float32),
        # decoder (ConvTranspose2d: (Cin, Cout, k, k))
        "w_u1": w(keys[2], (2 * hidden, hidden, k, k)),
        "b_u1": jnp.zeros((hidden,), jnp.float32),
        "w_u2": w(keys[3], (2 * hidden, out_channels, k, k)),
        "b_u2": jnp.zeros((out_channels,), jnp.float32),
    }


def _pad_cast_pack(wm, bias):
    P, K, Nc = wm.shape
    Kp, Np = _round_up(K, 128), _round_up(Nc, 128)
    w = jnp.pad(wm, ((0, 0), (0, Kp - K), (0, Np - Nc))).astype(jnp.bfloat16)
    b = jnp.pad(bias.astype(jnp.float32), (0, Np - Nc)).reshape(1, Np)
    return {"w": w, "b": b}


def prepare_pix2pix_params(params, *, kernel_size, padding, stride):
    s = stride

    def pack_conv(w, b):
        Cout, Cin, kh, kw = w.shape
        # K index = (ki*kw + kj)*Cin + ci  (tap-major, channel-minor)
        wm = jnp.transpose(w, (2, 3, 1, 0)).reshape(1, kh * kw * Cin, Cout)
        return _pad_cast_pack(wm, b)

    def pack_convT(w, b):
        Cin, Cout, kh, kw = w.shape
        assert kh % s == 0 and kw % s == 0
        mats = []
        for br in range(s):
            t0r = (br + padding) % s
            for bc in range(s):
                t0c = (bc + padding) % s
                w_sub = w[:, :, t0r::s, t0c::s]                 # (Cin, Cout, Jr, Jc)
                Jr, Jc = w_sub.shape[2], w_sub.shape[3]
                w_sub = jnp.transpose(w_sub, (2, 3, 0, 1)).reshape(Jr * Jc * Cin, Cout)
                mats.append(w_sub)                              # taps in j order
        return _pad_cast_pack(jnp.stack(mats, axis=0), b)

    return {
        "d1": pack_conv(params["w_d1"], params["b_d1"]),
        "d2": pack_conv(params["w_d2"], params["b_d2"]),
        "u1": pack_convT(params["w_u1"], params["b_u1"]),
        "u2": pack_convT(params["w_u2"], params["b_u2"]),
    }


# ----------------------------------------------------------------------------
# Pix2Pix forward (= UNet generator forward; discriminator unused at inference)
# ----------------------------------------------------------------------------
def pix2pix_forward(x_nchw, packed, *, kernel_size, padding, stride, relu_slope,
                    hidden, out_channels):
    # NCHW -> NHWC, cast to bf16 once (16x fewer bytes than casting patches)
    x = jnp.transpose(x_nchw, (0, 2, 3, 1)).astype(jnp.bfloat16)

    d1 = conv2d(x, packed["d1"], hidden, kernel_size, stride, padding,
                act="leaky", slope=relu_slope, out_dtype=jnp.bfloat16)
    d2 = conv2d(d1, packed["d2"], 2 * hidden, kernel_size, stride, padding,
                act="leaky", slope=relu_slope, out_dtype=jnp.bfloat16)

    u1 = conv_transpose2d(d2, packed["u1"], hidden, kernel_size, stride, padding,
                          act="relu", slope=0.0, out_dtype=jnp.bfloat16)
    u1 = jnp.concatenate([u1, d1], axis=-1)                     # skip connection

    out = conv_transpose2d(u1, packed["u2"], out_channels, kernel_size, stride,
                           padding, act="tanh", slope=0.0, out_dtype=jnp.float32)
    return jnp.transpose(out, (0, 3, 1, 2))                     # NHWC -> NCHW


# ----------------------------------------------------------------------------
# Pure-XLA f32 reference (for correctness check only)
# ----------------------------------------------------------------------------
def _ref_forward(x_nchw, params, *, kernel_size, padding, stride, relu_slope):
    x = jnp.transpose(x_nchw, (0, 2, 3, 1)).astype(jnp.float32)

    def leaky(v):
        return jnp.where(v >= 0, v, relu_slope * v)

    def conv(v, w, b):
        w_hwio = jnp.transpose(w, (2, 3, 1, 0))
        y = jax.lax.conv_general_dilated(
            v, w_hwio, (stride, stride),
            ((padding, padding), (padding, padding)),
            dimension_numbers=("NHWC", "HWIO", "NHWC"),
            precision=jax.lax.Precision.HIGHEST)
        return y + b

    def convT(v, w, b):
        _, _, kh, kw = w.shape
        w_hwio = jnp.transpose(w[:, :, ::-1, ::-1], (2, 3, 0, 1))
        y = jax.lax.conv_general_dilated(
            v, w_hwio, (1, 1),
            ((kh - 1 - padding, kh - 1 - padding),
             (kw - 1 - padding, kw - 1 - padding)),
            lhs_dilation=(stride, stride),
            dimension_numbers=("NHWC", "HWIO", "NHWC"),
            precision=jax.lax.Precision.HIGHEST)
        return y + b

    d1 = leaky(conv(x, params["w_d1"], params["b_d1"]))
    d2 = leaky(conv(d1, params["w_d2"], params["b_d2"]))
    u1 = jnp.maximum(convT(d2, params["w_u1"], params["b_u1"]), 0.0)
    u1 = jnp.concatenate([u1, d1], axis=-1)
    out = jnp.tanh(convT(u1, params["w_u2"], params["b_u2"]))
    return jnp.transpose(out, (0, 3, 1, 2))


if __name__ == "__main__":
    in_channels = 4
    out_channels = 4
    unet_hidden_channels = 8
    kernel_size = 4
    padding = 1
    stride = 2
    relu_slope = 0.2

    key = jax.random.PRNGKey(0)
    k_x, k_w = jax.random.split(key)
    x = jax.random.normal(k_x, (2, in_channels, 16, 16), dtype=jnp.float32)

    params = init_pix2pix_params(k_w, in_channels, out_channels,
                                 unet_hidden_channels, kernel_size)
    packed = prepare_pix2pix_params(params, kernel_size=kernel_size,
                                    padding=padding, stride=stride)

    fwd = jax.jit(functools.partial(
        pix2pix_forward,
        kernel_size=kernel_size, padding=padding, stride=stride,
        relu_slope=relu_slope, hidden=unet_hidden_channels,
        out_channels=out_channels))

    y = jax.block_until_ready(fwd(x, packed))
    assert y.shape == (2, out_channels, 16, 16), y.shape
    assert bool(jnp.all(jnp.isfinite(y)))

    # Correctness vs. f32 XLA reference (bf16 MXU inputs -> relaxed tolerance).
    y_ref = jax.block_until_ready(_ref_forward(
        x, params, kernel_size=kernel_size, padding=padding,
        stride=stride, relu_slope=relu_slope))
    max_err = float(jnp.max(jnp.abs(y - y_ref)))
    assert max_err < 5e-2, f"max abs err vs reference: {max_err}"

    print("KERNEL_OK")
</pallas_src>

<mosaic_0001>
module attributes {stable_mosaic.version = 11 : i64} {
  func.func @_mm_bias_act_1k_kernel(%arg0: i32, %arg1: i32, %arg2: i32, %arg3: memref<1x64x128xbf16, #tpu.memory_space<vmem>>, %arg4: memref<1x128x128xbf16, #tpu.memory_space<vmem>>, %arg5: memref<1x128xf32, #tpu.memory_space<vmem>>, %arg6: memref<1x64x128xbf16, #tpu.memory_space<vmem>>) attributes {dimension_semantics = [#tpu.dimension_semantics<parallel>, #tpu.dimension_semantics<parallel>, #tpu.dimension_semantics<parallel>], iteration_bounds = array<i64: 1, 2, 1>, scalar_prefetch = 0 : i64, scratch_operands = 0 : i64, tpu.core_type = #tpu.core_type<tc>, window_params = [{transform_indices = @transform_0, window_bounds = array<i64: 1, 64, 128>}, {transform_indices = @transform_1, window_bounds = array<i64: 1, 128, 128>}, {transform_indices = @transform_2, window_bounds = array<i64: 1, 128>}, {transform_indices = @transform_3, window_bounds = array<i64: 1, 64, 128>}]} {
    %c0 = arith.constant 0 : index
    %c0_0 = arith.constant 0 : index
    %c0_1 = arith.constant 0 : index
    %0 = vector.load %arg3[%c0, %c0_0, %c0_1] : memref<1x64x128xbf16, #tpu.memory_space<vmem>>, vector<1x64x128xbf16>
    %1 = vector.shape_cast %0 : vector<1x64x128xbf16> to vector<64x128xbf16>
    %c0_2 = arith.constant 0 : index
    %c0_3 = arith.constant 0 : index
    %c0_4 = arith.constant 0 : index
    %2 = vector.load %arg4[%c0_2, %c0_3, %c0_4] : memref<1x128x128xbf16, #tpu.memory_space<vmem>>, vector<1x128x128xbf16>
    %3 = vector.shape_cast %2 : vector<1x128x128xbf16> to vector<128x128xbf16>
    %cst = arith.constant dense<0.000000e+00> : vector<64x128xf32>
    %4 = tpu.matmul %1, %3, %cst {dimension_numbers = #tpu.dot_dimension_numbers<[1], [0], [0], [1], [0, 0, 1, 1], [], []>} : vector<64x128xbf16>, vector<128x128xbf16>, vector<64x128xf32> -> vector<64x128xf32>
    %c0_5 = arith.constant 0 : index
    %c0_6 = arith.constant 0 : index
    %5 = vector.load %arg5[%c0_5, %c0_6] : memref<1x128xf32, #tpu.memory_space<vmem>>, vector<1x128xf32>
    %6 = vector.broadcast %5 : vector<1x128xf32> to vector<64x128xf32>
    %7 = arith.addf %4, %6 : vector<64x128xf32>
    %cst_7 = arith.constant 0.000000e+00 : f32
    %8 = vector.broadcast %cst_7 : f32 to vector<64x128xf32>
    %9 = arith.cmpf oge, %7, %8 : vector<64x128xf32>
    %cst_8 = arith.constant 2.000000e-01 : f32
    %10 = vector.broadcast %cst_8 : f32 to vector<64x128xf32>
    %11 = arith.mulf %10, %7 : vector<64x128xf32>
    %12 = arith.select %9, %7, %11 : vector<64x128xi1>, vector<64x128xf32>
    %13 = arith.truncf %12 : vector<64x128xf32> to vector<64x128xbf16>
    %c0_9 = arith.constant 0 : index
    %c0_10 = arith.constant 0 : index
    %c0_11 = arith.constant 0 : index
    %14 = vector.load %arg6[%c0_9, %c0_10, %c0_11] : memref<1x64x128xbf16, #tpu.memory_space<vmem>>, vector<1x64x128xbf16>
    %15 = vector.shape_cast %14 : vector<1x64x128xbf16> to vector<64x128xbf16>
    %16 = vector.shape_cast %13 : vector<64x128xbf16> to vector<1x64x128xbf16>
    tpu.vector_store %arg6[%c0_9, %c0_10, %c0_11], %16 {strides = array<i32>} : memref<1x64x128xbf16, #tpu.memory_space<vmem>>, vector<1x64x128xbf16>,
    return
  }
  func.func @transform_0(%arg0: i32, %arg1: i32, %arg2: i32) -> (i32, i32, i32) {
    %c0_i32 = arith.constant 0 : i32
    %c0_i32_0 = arith.constant 0 : i32
    return %arg0, %arg1, %c0_i32 : i32, i32, i32
  }
  func.func @transform_1(%arg0: i32, %arg1: i32, %arg2: i32) -> (i32, i32, i32) {
    %c0_i32 = arith.constant 0 : i32
    %c0_i32_0 = arith.constant 0 : i32
    return %arg0, %c0_i32, %arg2 : i32, i32, i32
  }
  func.func @transform_2(%arg0: i32, %arg1: i32, %arg2: i32) -> (i32, i32) {
    %c0_i32 = arith.constant 0 : i32
    %c0_i32_0 = arith.constant 0 : i32
    return %c0_i32, %arg2 : i32, i32
  }
  func.func @transform_3(%arg0: i32, %arg1: i32, %arg2: i32) -> (i32, i32, i32) {
    %c0_i32 = arith.constant 0 : i32
    return %arg0, %arg1, %arg2 : i32, i32, i32
  }
}

module attributes {stable_mosaic.version = 11 : i64} {
  func.func @_mm_bias_act_1k_kernel(%arg0: i32, %arg1: i32, %arg2: i32, %arg3: memref<1x16x128xbf16, #tpu.memory_space<vmem>>, %arg4: memref<1x128x128xbf16, #tpu.memory_space<vmem>>, %arg5: memref<1x128xf32, #tpu.memory_space<vmem>>, %arg6: memref<1x16x128xbf16, #tpu.memory_space<vmem>>) attributes {dimension_semantics = [#tpu.dimension_semantics<parallel>, #tpu.dimension_semantics<parallel>, #tpu.dimension_semantics<parallel>], iteration_bounds = array<i64: 1, 2, 1>, scalar_prefetch = 0 : i64, scratch_operands = 0 : i64, tpu.core_type = #tpu.core_type<tc>, window_params = [{transform_indices = @transform_0, window_bounds = array<i64: 1, 16, 128>}, {transform_indices = @transform_1, window_bounds = array<i64: 1, 128, 128>}, {transform_indices = @transform_2, window_bounds = array<i64: 1, 128>}, {transform_indices = @transform_3, window_bounds = array<i64: 1, 16, 128>}]} {
    %c0 = arith.constant 0 : index
    %c0_0 = arith.constant 0 : index
    %c0_1 = arith.constant 0 : index
    %0 = vector.load %arg3[%c0, %c0_0, %c0_1] : memref<1x16x128xbf16, #tpu.memory_space<vmem>>, vector<1x16x128xbf16>
    %1 = vector.shape_cast %0 : vector<1x16x128xbf16> to vector<16x128xbf16>
    %c0_2 = arith.constant 0 : index
    %c0_3 = arith.constant 0 : index
    %c0_4 = arith.constant 0 : index
    %2 = vector.load %arg4[%c0_2, %c0_3, %c0_4] : memref<1x128x128xbf16, #tpu.memory_space<vmem>>, vector<1x128x128xbf16>
    %3 = vector.shape_cast %2 : vector<1x128x128xbf16> to vector<128x128xbf16>
    %cst = arith.constant dense<0.000000e+00> : vector<16x128xf32>
    %4 = tpu.matmul %1, %3, %cst {dimension_numbers = #tpu.dot_dimension_numbers<[1], [0], [0], [1], [0, 0, 1, 1], [], []>} : vector<16x128xbf16>, vector<128x128xbf16>, vector<16x128xf32> -> vector<16x128xf32>
    %c0_5 = arith.constant 0 : index
    %c0_6 = arith.constant 0 : index
    %5 = vector.load %arg5[%c0_5, %c0_6] : memref<1x128xf32, #tpu.memory_space<vmem>>, vector<1x128xf32>
    %6 = vector.broadcast %5 : vector<1x128xf32> to vector<16x128xf32>
    %7 = arith.addf %4, %6 : vector<16x128xf32>
    %cst_7 = arith.constant 0.000000e+00 : f32
    %8 = vector.broadcast %cst_7 : f32 to vector<16x128xf32>
    %9 = arith.cmpf oge, %7, %8 : vector<16x128xf32>
    %cst_8 = arith.constant 2.000000e-01 : f32
    %10 = vector.broadcast %cst_8 : f32 to vector<16x128xf32>
    %11 = arith.mulf %10, %7 : vector<16x128xf32>
    %12 = arith.select %9, %7, %11 : vector<16x128xi1>, vector<16x128xf32>
    %13 = arith.truncf %12 : vector<16x128xf32> to vector<16x128xbf16>
    %c0_9 = arith.constant 0 : index
    %c0_10 = arith.constant 0 : index
    %c0_11 = arith.constant 0 : index
    %14 = vector.load %arg6[%c0_9, %c0_10, %c0_11] : memref<1x16x128xbf16, #tpu.memory_space<vmem>>, vector<1x16x128xbf16>
    %15 = vector.shape_cast %14 : vector<1x16x128xbf16> to vector<16x128xbf16>
    %16 = vector.shape_cast %13 : vector<16x128xbf16> to vector<1x16x128xbf16>
    tpu.vector_store %arg6[%c0_9, %c0_10, %c0_11], %16 {strides = array<i32>} : memref<1x16x128xbf16, #tpu.memory_space<vmem>>, vector<1x16x128xbf16>,
    return
  }
  func.func @transform_0(%arg0: i32, %arg1: i32, %arg2: i32) -> (i32, i32, i32) {
    %c0_i32 = arith.constant 0 : i32
    %c0_i32_0 = arith.constant 0 : i32
    return %arg0, %arg1, %c0_i32 : i32, i32, i32
  }
  func.func @transform_1(%arg0: i32, %arg1: i32, %arg2: i32) -> (i32, i32, i32) {
    %c0_i32 = arith.constant 0 : i32
    %c0_i32_0 = arith.constant 0 : i32
    return %arg0, %c0_i32, %arg2 : i32, i32, i32
  }
  func.func @transform_2(%arg0: i32, %arg1: i32, %arg2: i32) -> (i32, i32) {
    %c0_i32 = arith.constant 0 : i32
    %c0_i32_0 = arith.constant 0 : i32
    return %c0_i32, %arg2 : i32, i32
  }
  func.func @transform_3(%arg0: i32, %arg1: i32, %arg2: i32) -> (i32, i32, i32) {
    %c0_i32 = arith.constant 0 : i32
    return %arg0, %arg1, %arg2 : i32, i32, i32
  }
}

module attributes {stable_mosaic.version = 11 : i64} {
  func.func @_mm_bias_act_1k_kernel(%arg0: i32, %arg1: i32, %arg2: i32, %arg3: memref<1x32x128xbf16, #tpu.memory_space<vmem>>, %arg4: memref<1x128x128xbf16, #tpu.memory_space<vmem>>, %arg5: memref<1x128xf32, #tpu.memory_space<vmem>>, %arg6: memref<1x32x128xbf16, #tpu.memory_space<vmem>>) attributes {dimension_semantics = [#tpu.dimension_semantics<parallel>, #tpu.dimension_semantics<parallel>, #tpu.dimension_semantics<parallel>], iteration_bounds = array<i64: 4, 1, 1>, scalar_prefetch = 0 : i64, scratch_operands = 0 : i64, tpu.core_type = #tpu.core_type<tc>, window_params = [{transform_indices = @transform_0, window_bounds = array<i64: 1, 32, 128>}, {transform_indices = @transform_1, window_bounds = array<i64: 1, 128, 128>}, {transform_indices = @transform_2, window_bounds = array<i64: 1, 128>}, {transform_indices = @transform_3, window_bounds = array<i64: 1, 32, 128>}]} {
    %c0 = arith.constant 0 : index
    %c0_0 = arith.constant 0 : index
    %c0_1 = arith.constant 0 : index
    %0 = vector.load %arg3[%c0, %c0_0, %c0_1] : memref<1x32x128xbf16, #tpu.memory_space<vmem>>, vector<1x32x128xbf16>
    %1 = vector.shape_cast %0 : vector<1x32x128xbf16> to vector<32x128xbf16>
    %c0_2 = arith.constant 0 : index
    %c0_3 = arith.constant 0 : index
    %c0_4 = arith.constant 0 : index
    %2 = vector.load %arg4[%c0_2, %c0_3, %c0_4] : memref<1x128x128xbf16, #tpu.memory_space<vmem>>, vector<1x128x128xbf16>
    %3 = vector.shape_cast %2 : vector<1x128x128xbf16> to vector<128x128xbf16>
    %cst = arith.constant dense<0.000000e+00> : vector<32x128xf32>
    %4 = tpu.matmul %1, %3, %cst {dimension_numbers = #tpu.dot_dimension_numbers<[1], [0], [0], [1], [0, 0, 1, 1], [], []>} : vector<32x128xbf16>, vector<128x128xbf16>, vector<32x128xf32> -> vector<32x128xf32>
    %c0_5 = arith.constant 0 : index
    %c0_6 = arith.constant 0 : index
    %5 = vector.load %arg5[%c0_5, %c0_6] : memref<1x128xf32, #tpu.memory_space<vmem>>, vector<1x128xf32>
    %6 = vector.broadcast %5 : vector<1x128xf32> to vector<32x128xf32>
    %7 = arith.addf %4, %6 : vector<32x128xf32>
    %cst_7 = arith.constant 0.000000e+00 : f32
    %8 = vector.broadcast %cst_7 : f32 to vector<32x128xf32>
    %9 = arith.maximumf %7, %8 : vector<32x128xf32>
    %10 = arith.truncf %9 : vector<32x128xf32> to vector<32x128xbf16>
    %c0_8 = arith.constant 0 : index
    %c0_9 = arith.constant 0 : index
    %c0_10 = arith.constant 0 : index
    %11 = vector.load %arg6[%c0_8, %c0_9, %c0_10] : memref<1x32x128xbf16, #tpu.memory_space<vmem>>, vector<1x32x128xbf16>
    %12 = vector.shape_cast %11 : vector<1x32x128xbf16> to vector<32x128xbf16>
    %13 = vector.shape_cast %10 : vector<32x128xbf16> to vector<1x32x128xbf16>
    tpu.vector_store %arg6[%c0_8, %c0_9, %c0_10], %13 {strides = array<i32>} : memref<1x32x128xbf16, #tpu.memory_space<vmem>>, vector<1x32x128xbf16>,
    return
  }
  func.func @transform_0(%arg0: i32, %arg1: i32, %arg2: i32) -> (i32, i32, i32) {
    %c0_i32 = arith.constant 0 : i32
    %c0_i32_0 = arith.constant 0 : i32
    return %arg0, %arg1, %c0_i32 : i32, i32, i32
  }
  func.func @transform_1(%arg0: i32, %arg1: i32, %arg2: i32) -> (i32, i32, i32) {
    %c0_i32 = arith.constant 0 : i32
    %c0_i32_0 = arith.constant 0 : i32
    return %arg0, %c0_i32, %arg2 : i32, i32, i32
  }
  func.func @transform_2(%arg0: i32, %arg1: i32, %arg2: i32) -> (i32, i32) {
    %c0_i32 = arith.constant 0 : i32
    %c0_i32_0 = arith.constant 0 : i32
    return %c0_i32, %arg2 : i32, i32
  }
  func.func @transform_3(%arg0: i32, %arg1: i32, %arg2: i32) -> (i32, i32, i32) {
    %c0_i32 = arith.constant 0 : i32
    return %arg0, %arg1, %arg2 : i32, i32, i32
  }
}

module attributes {stable_mosaic.version = 11 : i64} {
  func.func @_mm_bias_act_1k_kernel(%arg0: i32, %arg1: i32, %arg2: i32, %arg3: memref<1x128x128xbf16, #tpu.memory_space<vmem>>, %arg4: memref<1x128x128xbf16, #tpu.memory_space<vmem>>, %arg5: memref<1x128xf32, #tpu.memory_space<vmem>>, %arg6: memref<1x128x128xf32, #tpu.memory_space<vmem>>) attributes {dimension_semantics = [#tpu.dimension_semantics<parallel>, #tpu.dimension_semantics<parallel>, #tpu.dimension_semantics<parallel>], iteration_bounds = array<i64: 4, 1, 1>, scalar_prefetch = 0 : i64, scratch_operands = 0 : i64, tpu.core_type = #tpu.core_type<tc>, window_params = [{transform_indices = @transform_0, window_bounds = array<i64: 1, 128, 128>}, {transform_indices = @transform_1, window_bounds = array<i64: 1, 128, 128>}, {transform_indices = @transform_2, window_bounds = array<i64: 1, 128>}, {transform_indices = @transform_3, window_bounds = array<i64: 1, 128, 128>}]} {
    %c0 = arith.constant 0 : index
    %c0_0 = arith.constant 0 : index
    %c0_1 = arith.constant 0 : index
    %0 = vector.load %arg3[%c0, %c0_0, %c0_1] : memref<1x128x128xbf16, #tpu.memory_space<vmem>>, vector<1x128x128xbf16>
    %1 = vector.shape_cast %0 : vector<1x128x128xbf16> to vector<128x128xbf16>
    %c0_2 = arith.constant 0 : index
    %c0_3 = arith.constant 0 : index
    %c0_4 = arith.constant 0 : index
    %2 = vector.load %arg4[%c0_2, %c0_3, %c0_4] : memref<1x128x128xbf16, #tpu.memory_space<vmem>>, vector<1x128x128xbf16>
    %3 = vector.shape_cast %2 : vector<1x128x128xbf16> to vector<128x128xbf16>
    %cst = arith.constant dense<0.000000e+00> : vector<128x128xf32>
    %4 = tpu.matmul %1, %3, %cst {dimension_numbers = #tpu.dot_dimension_numbers<[1], [0], [0], [1], [0, 0, 1, 1], [], []>} : vector<128x128xbf16>, vector<128x128xbf16>, vector<128x128xf32> -> vector<128x128xf32>
    %c0_5 = arith.constant 0 : index
    %c0_6 = arith.constant 0 : index
    %5 = vector.load %arg5[%c0_5, %c0_6] : memref<1x128xf32, #tpu.memory_space<vmem>>, vector<1x128xf32>
    %6 = vector.broadcast %5 : vector<1x128xf32> to vector<128x128xf32>
    %7 = arith.addf %4, %6 : vector<128x128xf32>
    %8 = math.tanh %7 : vector<128x128xf32>
    %c0_7 = arith.constant 0 : index
    %c0_8 = arith.constant 0 : index
    %c0_9 = arith.constant 0 : index
    %9 = vector.load %arg6[%c0_7, %c0_8, %c0_9] : memref<1x128x128xf32, #tpu.memory_space<vmem>>, vector<1x128x128xf32>
    %10 = vector.shape_cast %9 : vector<1x128x128xf32> to vector<128x128xf32>
    %11 = vector.shape_cast %8 : vector<128x128xf32> to vector<1x128x128xf32>
    tpu.vector_store %arg6[%c0_7, %c0_8, %c0_9], %11 {strides = array<i32>} : memref<1x128x128xf32, #tpu.memory_space<vmem>>, vector<1x128x128xf32>,
    return
  }
  func.func @transform_0(%arg0: i32, %arg1: i32, %arg2: i32) -> (i32, i32, i32) {
    %c0_i32 = arith.constant 0 : i32
    %c0_i32_0 = arith.constant 0 : i32
    return %arg0, %arg1, %c0_i32 : i32, i32, i32
  }
  func.func @transform_1(%arg0: i32, %arg1: i32, %arg2: i32) -> (i32, i32, i32) {
    %c0_i32 = arith.constant 0 : i32
    %c0_i32_0 = arith.constant 0 : i32
    return %arg0, %c0_i32, %arg2 : i32, i32, i32
  }
  func.func @transform_2(%arg0: i32, %arg1: i32, %arg2: i32) -> (i32, i32) {
    %c0_i32 = arith.constant 0 : i32
    %c0_i32_0 = arith.constant 0 : i32
    return %c0_i32, %arg2 : i32, i32
  }
  func.func @transform_3(%arg0: i32, %arg1: i32, %arg2: i32) -> (i32, i32, i32) {
    %c0_i32 = arith.constant 0 : i32
    return %arg0, %arg1, %arg2 : i32, i32, i32
  }
}

</mosaic_0001>

<bundles_post_ra>
// kernel: pix2pix_forward.4
= control target key start
LH: loop header
LB: loop body
LE: loop exit
PB: predicated region body
PF: predicated region fallthrough
CT: control target
= control target key end

     0   :  { %s833_s12 = smov 0   ;;  %s835_s13 = smov 0   ;;  %s906_s0 = inlined_call_operand.vmem [shape: bf16[1,128,128], index: 0, kind: input, shape index: {}]   ;;  %s907_s1 = inlined_call_operand.vmem [shape: bf16[1,128,128], index: 1, kind: input, shape index: {}]   ;;  %s908_s2 = inlined_call_operand.vmem [shape: f32[1,128], index: 2, kind: input, shape index: {}]   ;;  %s909_s3 = inlined_call_operand.vmem [shape: bf16[1,128,128], index: 3, kind: output, shape index: {}]  }
   0x1   :  { %s837_s14 = smov 0  }
   0x2 LB: > { %s28_s15 = sadd.s32 1, %s807_s13  ;;  %p642_p0 = scmp.ge.s32.totalorder %s811_s14, 1  ;;  %s811_s14 = sphi %s837_s14, %s13_s14   ;;  %s807_s13 = sphi %s835_s13, %s911_s13   ;;  %s803_s12 = sphi %s833_s12, %s910_s12  }
   0x3   : > { %p30_p1 = scmp.ge.s32.totalorder %s28_s15, 2  ;;  %p190_p2 = scmp.lt.s32.totalorder %s811_s14, 3 }
   0x5   : > { %s913_s15 = smov (%p30_p1, %s28_s15), 0  ;;  %p191_p3 = pnand %p642_p0, %p190_p2 }
   0x6   : > { %s643_s18 = sshll.u32 (!%p191_p3), %s803_s12, 3 }
   0x7   : > { %194 = sbr.rel (%p191_p3) target bundleno = 254 (0xfe), region = 32  ;;  %p239_p4 = scmp.lt.s32.totalorder (!%p191_p3), %s643_s18, 15 }
   0xc   : > { %v777_v0 = vld [vmem:[%s907_s1 + $0x38] sm:$0xff]   ;;  %v778_v1 = vld [vmem:[%s907_s1 + $0x30] sm:$0xff]   ;;  %s915_s18 = smov (!%p239_p4, %s643_s18), 15  ;;  %v779_v2 = vld [vmem:[%s907_s1 + $0x28] sm:$0xff]  }
   0xd   : > { %713 = vmatprep.subr.bf16.mxu0 %v777_v0  ;;  %737 = vmatprep.subr.bf16.mxu1 %v777_v0  ;;  %s644_s23 = sshll.u32 %s915_s18, 2  ;;  %v780_v3 = vld [vmem:[%s907_s1 + $0x20] sm:$0xff]   ;;  %v781_v6 = vld [vmem:[%s907_s1 + $0x18] sm:$0xff]   ;;  %v782_v7 = vld [vmem:[%s907_s1 + $0x10] sm:$0xff]  }
   0xe   : > { %714 = vmatpush3.bf16.msra.mxu0 %v777_v0  ;;  %745 = vmatpush3.bf16.msra.mxu1 %v777_v0  ;;  %s868_s26 = scalar_lea.vmem %s906_s0, %s644_s23  ;;  %v783_v8 = vld [vmem:[%s907_s1 + $0x8] sm:$0xff]   ;;  %v784_v9 = vld [vmem:[%s907_s1] sm:$0xff]   ;;  %s268_s17 = scalar_lea.vmem %s909_s3, %s644_s23 }
   0xf   : > { %715 = vmatprep.subr.bf16.mxu0 %v778_v1  ;;  %738 = vmatprep.subr.bf16.mxu1 %v778_v1  ;;  %v785_v4 = vld [vmem:[%s868_s26] sm:$0xff]   ;;  %v786_v5 = vld [vmem:[%s868_s26 + $0x10] sm:$0xff]   ;;  %v787_v10 = vld [vmem:[%s868_s26 + $0x8] sm:$0xff]  }
  0x10   : > { %729 = vmatprep.mubr.bf16.mxu0 %v785_v4  ;;  %733 = vmatprep.mubr.bf16.mxu1 %v786_v5  ;;  %v788_v11 = vld [vmem:[%s868_s26 + $0x18] sm:$0xff]   ;;  %v647_v12 = vld [vmem:[%s908_s2] ss:$0 sm:$0xff] }
  0x12   : > { %716 = vmatpush3.bf16.msra.mxu0 %v778_v1  ;;  %746 = vmatpush3.bf16.msra.mxu1 %v778_v1 }
  0x13   : > { %717 = vmatprep.subr.bf16.mxu0 %v779_v2  ;;  %739 = vmatprep.subr.bf16.mxu1 %v779_v2 }
  0x16   : > { %718 = vmatpush3.bf16.msra.mxu0 %v779_v2  ;;  %747 = vmatpush3.bf16.msra.mxu1 %v779_v2 }
  0x17   : > { %719 = vmatprep.subr.bf16.mxu0 %v780_v3  ;;  %740 = vmatprep.subr.bf16.mxu1 %v780_v3 }
  0x1a   : > { %720 = vmatpush3.bf16.msra.mxu0 %v780_v3  ;;  %748 = vmatpush3.bf16.msra.mxu1 %v780_v3 }
  0x1b   : > { %721 = vmatprep.subr.bf16.mxu0 %v781_v6  ;;  %741 = vmatprep.subr.bf16.mxu1 %v781_v6 }
  0x1e   : > { %722 = vmatpush3.bf16.msra.mxu0 %v781_v6  ;;  %749 = vmatpush3.bf16.msra.mxu1 %v781_v6 }
  0x1f   : > { %723 = vmatprep.subr.bf16.mxu0 %v782_v7  ;;  %742 = vmatprep.subr.bf16.mxu1 %v782_v7 }
  0x22   : > { %724 = vmatpush3.bf16.msra.mxu0 %v782_v7  ;;  %750 = vmatpush3.bf16.msra.mxu1 %v782_v7 }
  0x23   : > { %725 = vmatprep.subr.bf16.mxu0 %v783_v8  ;;  %743 = vmatprep.subr.bf16.mxu1 %v783_v8 }
  0x26   : > { %726 = vmatpush3.bf16.msra.mxu0 %v783_v8  ;;  %751 = vmatpush3.bf16.msra.mxu1 %v783_v8 }
  0x27   : > { %727 = vmatprep.subr.bf16.mxu0 %v784_v9  ;;  %744 = vmatprep.subr.bf16.mxu1 %v784_v9 }
  0x2a   : > { %728 = vmatpush3.bf16.msra.mxu0 %v784_v9  ;;  %752 = vmatpush3.bf16.msra.mxu1 %v784_v9 }
  0x2d   : > { %730 = vmatmul.mubr.bf16.vlgmr.msra.gmra.mxu0 %v787_v10  ;;  %734 = vmatmul.mubr.bf16.vlgmr.msra.gmra.mxu1 %v788_v11 }
  0xed   : > { %v731_v13 = vpop.f32.mrf.mxu0  ;;  %v735_v14 = vpop.f32.mrf.mxu1 }
  0xee   : > { %v417_v15 = vadd.f32 %v731_v13, %v647_v12  ;;  %v433_v16 = vadd.f32 %v735_v14, %v647_v12 }
  0xef   : > { %v408_v17 = vpop.f32.mrf.mxu0  ;;  %v424_v18 = vpop.f32.mrf.mxu1 }
  0xf0   : > { %vm441_vm0 = vcmp.ge.f32.partialorder %v417_v15, 0.0  ;;  %v449_v19 = vmul.f32 0.2, %v417_v15  ;;  %vm445_vm1 = vcmp.ge.f32.partialorder %v433_v16, 0.0  ;;  %v453_v20 = vmul.f32 0.2, %v433_v16 }
  0xf1   : > { %v409_v21 = vadd.f32 %v647_v12, %v408_v17  ;;  %v732_v22 = vpop.f32.mrf.mxu0  ;;  %v736_v23 = vpop.f32.mrf.mxu1  ;;  %v425_v24 = vadd.f32 %v647_v12, %v424_v18 }
  0xf2   : > { %v420_v25 = vadd.f32 %v732_v22, %v647_v12  ;;  %v436_v26 = vadd.f32 %v736_v23, %v647_v12  ;;  %v457_v27 = vsel %vm441_vm0, %v417_v15, %v449_v19  ;;  %v461_v28 = vsel %vm445_vm1, %v433_v16, %v453_v20 }
  0xf3   : > { %v411_v29 = vpop.f32.mrf.mxu0  ;;  %v427_v30 = vpop.f32.mrf.mxu1  ;;  %vm439_vm4 = vcmp.ge.f32.partialorder %v409_v21, 0.0  ;;  %v447_v33 = vmul.f32 0.2, %v409_v21  ;;  %vm443_vm5 = vcmp.ge.f32.partialorder %v425_v24, 0.0  ;;  %v451_v36 = vmul.f32 0.2, %v425_v24 }
  0xf4   : > { %vm442_vm2 = vcmp.ge.f32.partialorder %v420_v25, 0.0  ;;  %v450_v31 = vmul.f32 0.2, %v420_v25  ;;  %vm446_vm3 = vcmp.ge.f32.partialorder %v436_v26, 0.0  ;;  %v454_v32 = vmul.f32 0.2, %v436_v26 }
  0xf5   : > { %v412_v34 = vadd.f32 %v647_v12, %v411_v29  ;;  %v428_v35 = vadd.f32 %v647_v12, %v427_v30  ;;  %v455_v43 = vsel %vm439_vm4, %v409_v21, %v447_v33  ;;  %v459_v45 = vsel %vm443_vm5, %v425_v24, %v451_v36 }
  0xf6   : > { %v458_v37 = vsel %vm442_vm2, %v420_v25, %v450_v31  ;;  %v462_v38 = vsel %vm446_vm3, %v436_v26, %v454_v32 }
  0xf7   : > { %v686_v39 = vpack.c.bf16 %v458_v37, %v457_v27  ;;  %v696_v40 = vpack.c.bf16 %v462_v38, %v461_v28  ;;  %vm440_vm6 = vcmp.ge.f32.partialorder %v412_v34, 0.0  ;;  %v448_v41 = vmul.f32 0.2, %v412_v34 }
  0xf8   : > { %vm444_vm7 = vcmp.ge.f32.partialorder %v428_v35, 0.0  ;;  %v452_v42 = vmul.f32 0.2, %v428_v35 }
  0xf9   : > { %698 = vst [vmem:[%s268_s17 + $0x8] sm:$0xff] %v686_v39   ;;  %700 = vst [vmem:[%s268_s17 + $0x18] sm:$0xff] %v696_v40   ;;  %v456_v44 = vsel %vm440_vm6, %v412_v34, %v448_v41 }
  0xfa   : > { %v681_v46 = vpack.c.bf16 %v456_v44, %v455_v43  ;;  %v460_v47 = vsel %vm444_vm7, %v428_v35, %v452_v42 }
  0xfb   : > { %v691_v48 = vpack.c.bf16 %v460_v47, %v459_v45 }
  0xfc   : > { %682 = vst [vmem:[%s268_s17] sm:$0xff] %v681_v46  }
  0xfd   : > { %699 = vst [vmem:[%s268_s17 + $0x10] sm:$0xff] %v691_v48  }
  0xfe PF: > { %s13_s14 = sadd.s32 1, %s811_s14   ;;  %s910_s12 = smov %s807_s13 }
  0xff   : > { %p10_p5 = scmp.ge.s32.totalorder %s13_s14, 4   ;;  %s911_s13 = smov %s913_s15 }
 0x101   :  { %12 = sbr.rel (!%p10_p5) target bundleno = 2 (0x2), region = 68 }

// kernel: pix2pix_forward.5
= control target key start
LH: loop header
LB: loop body
LE: loop exit
PB: predicated region body
PF: predicated region fallthrough
CT: control target
= control target key end

     0   :  { %s682_s12 = smov 0   ;;  %s684_s13 = smov 0   ;;  %s749_s0 = inlined_call_operand.vmem [shape: bf16[1,32,128], index: 0, kind: input, shape index: {}]   ;;  %s750_s1 = inlined_call_operand.vmem [shape: bf16[1,128,128], index: 1, kind: input, shape index: {}]   ;;  %s751_s2 = inlined_call_operand.vmem [shape: f32[1,128], index: 2, kind: input, shape index: {}]   ;;  %s752_s3 = inlined_call_operand.vmem [shape: bf16[1,32,128], index: 3, kind: output, shape index: {}]  }
   0x1   :  { %s686_s14 = smov 0  }
   0x2 LB: > { %s28_s15 = sadd.s32 1, %s654_s13  ;;  %p546_p0 = scmp.ge.s32.totalorder %s658_s14, 1  ;;  %s658_s14 = sphi %s686_s14, %s13_s14   ;;  %s654_s13 = sphi %s684_s13, %s754_s13   ;;  %s650_s12 = sphi %s682_s12, %s753_s12  }
   0x3   : > { %p30_p1 = scmp.ge.s32.totalorder %s28_s15, 2  ;;  %p190_p2 = scmp.lt.s32.totalorder %s658_s14, 3 }
   0x5   : > { %s756_s15 = smov (%p30_p1, %s28_s15), 0  ;;  %p191_p3 = pnand %p546_p0, %p190_p2 }
   0x6   : > { %s547_s20 = sshll.u32 (!%p191_p3), %s650_s12, 1 }
   0x7   : > { %194 = sbr.rel (%p191_p3) target bundleno = 250 (0xfa), region = 32  ;;  %p239_p4 = scmp.lt.s32.totalorder (!%p191_p3), %s547_s20, 3 }
   0xc   : > { %v627_v0 = vld [vmem:[%s750_s1 + $0x38] sm:$0xff]   ;;  %v660_v1 = vmov 0.0   ;;  %v628_v2 = vld [vmem:[%s750_s1 + $0x30] sm:$0xff]   ;;  %vm661_vm0 = vmmov 0   ;;  %s758_s20 = smov (!%p239_p4, %s547_s20), 3  ;;  %v629_v3 = vld [vmem:[%s750_s1 + $0x28] sm:$0xff]  }
   0xd   : > { %581 = vmatprep.subr.bf16.mxu0 %v660_v1  ;;  %597 = vmatprep.mubr.msk.bf16.mxu0 %vm661_vm0, %v660_v1  ;;  %s548_s23 = sshll.u32 %s758_s20, 2  ;;  %v630_v4 = vld [vmem:[%s750_s1 + $0x20] sm:$0xff]   ;;  %v631_v5 = vld [vmem:[%s750_s1 + $0x18] sm:$0xff]   ;;  %v632_v6 = vld [vmem:[%s750_s1 + $0x10] sm:$0xff]  }
   0xe   : > { %582 = vmatpush3.bf16.msra.mxu0 %v627_v0  ;;  %s244_s26 = scalar_lea.vmem %s749_s0, %s548_s23  ;;  %v633_v7 = vld [vmem:[%s750_s1 + $0x8] sm:$0xff]   ;;  %v634_v8 = vld [vmem:[%s750_s1] sm:$0xff]   ;;  %s268_s17 = scalar_lea.vmem %s752_s3, %s548_s23 }
   0xf   : > { %583 = vmatprep.subr.bf16.mxu0 %v660_v1  ;;  %v635_v9 = vld [vmem:[%s244_s26] sm:$0xff]  }
  0x10   : > { %v551_v10 = vld [vmem:[%s751_s2] ss:$0 sm:$0xff] }
  0x12   : > { %584 = vmatpush3.bf16.msra.mxu0 %v628_v2 }
  0x13   : > { %585 = vmatprep.subr.bf16.mxu0 %v660_v1 }
  0x16   : > { %586 = vmatpush3.bf16.msra.mxu0 %v629_v3 }
  0x17   : > { %587 = vmatprep.subr.bf16.mxu0 %v660_v1 }
  0x1a   : > { %588 = vmatpush3.bf16.msra.mxu0 %v630_v4 }
  0x1b   : > { %589 = vmatprep.subr.bf16.mxu0 %v660_v1 }
  0x1e   : > { %590 = vmatpush3.bf16.msra.mxu0 %v631_v5 }
  0x1f   : > { %591 = vmatprep.subr.bf16.mxu0 %v660_v1 }
  0x22   : > { %592 = vmatpush3.bf16.msra.mxu0 %v632_v6 }
  0x23   : > { %593 = vmatprep.subr.bf16.mxu0 %v660_v1 }
  0x26   : > { %594 = vmatpush3.bf16.msra.mxu0 %v633_v7 }
  0x27   : > { %595 = vmatprep.subr.bf16.mxu0 %v660_v1 }
  0x2a   : > { %596 = vmatpush3.bf16.msra.mxu0 %v634_v8 }
  0x2d   : > { %598 = vmatmul.mubr.bf16.vlgmr.msra.gmra.mxu0 %v635_v9 }
  0xed   : > { %v384_v11 = vpop.f32.mrf.mxu0 }
  0xee   : > { %v385_v12 = vadd.f32 %v551_v10, %v384_v11 }
  0xef   : > { %v599_v13 = vpop.f32.mrf.mxu0 }
  0xf0   : > { %v393_v15 = vmul.f32 0.2, %v385_v12  ;;  %vm391_vm1 = vcmp.ge.f32.partialorder %v385_v12, 0.0 }
  0xf1   : > { %v387_v14 = vpop.f32.mrf.mxu0 }
  0xf2   : > { %v388_v16 = vadd.f32 %v551_v10, %v387_v14  ;;  %v395_v19 = vsel %vm391_vm1, %v385_v12, %v393_v15 }
  0xf3   : > { %v600_v17 = vpop.f32.mrf.mxu0 }
  0xf4   : > { %vm392_vm2 = vcmp.ge.f32.partialorder %v388_v16, 0.0  ;;  %v394_v18 = vmul.f32 0.2, %v388_v16 }
  0xf6   : > { %v396_v20 = vsel %vm392_vm2, %v388_v16, %v394_v18 }
  0xf7   : > { %v570_v21 = vpack.c.bf16 %v396_v20, %v395_v19 }
  0xf9   : > { %571 = vst [vmem:[%s268_s17] sm:$0xff] %v570_v21  }
  0xfa PF: > { %s13_s14 = sadd.s32 1, %s658_s14   ;;  %s753_s12 = smov %s654_s13 }
  0xfb   : > { %p10_p5 = scmp.ge.s32.totalorder %s13_s14, 4   ;;  %s754_s13 = smov %s756_s15 }
  0xfd   :  { %12 = sbr.rel (!%p10_p5) target bundleno = 2 (0x2), region = 68 }

// kernel: pix2pix_forward.6
= control target key start
LH: loop header
LB: loop body
LE: loop exit
PB: predicated region body
PF: predicated region fallthrough
CT: control target
= control target key end

     0   :  { %s716_s12 = smov 0   ;;  %s718_s13 = smov 0   ;;  %s763_s0 = inlined_call_operand.vmem [shape: bf16[4,32,128], index: 0, kind: input, shape index: {}]   ;;  %s764_s1 = inlined_call_operand.vmem [shape: bf16[4,128,128], index: 1, kind: input, shape index: {}]   ;;  %s765_s2 = inlined_call_operand.vmem [shape: f32[1,128], index: 2, kind: input, shape index: {}]   ;;  %s766_s3 = inlined_call_operand.vmem [shape: bf16[4,32,128], index: 3, kind: output, shape index: {}]  }
   0x1   :  { %s720_s14 = smov 0  }
   0x2 LB: > { %s32_s15 = sadd.s32 1, %s690_s13  ;;  %p566_p0 = scmp.ge.s32.totalorder %s694_s14, 1  ;;  %s694_s14 = sphi %s720_s14, %s13_s14   ;;  %s690_s13 = sphi %s718_s13, %s768_s13   ;;  %s686_s12 = sphi %s716_s12, %s767_s12  }
   0x3   : > { %p34_p1 = scmp.ge.s32.totalorder %s32_s15, 4  ;;  %p190_p2 = scmp.lt.s32.totalorder %s694_s14, 5 }
   0x5   : > { %s770_s15 = smov (%p34_p1, %s32_s15), 0  ;;  %p191_p3 = pnand %p566_p0, %p190_p2 }
   0x6   : > { %p237_p4 = scmp.lt.s32.totalorder (!%p191_p3), %s686_s12, 3 }
   0x7   : > { %194 = sbr.rel (%p191_p3) target bundleno = 254 (0xfe), region = 32 }
   0xc   : > { %s772_s12 = smov (!%p237_p4, %s686_s12), 3  ;;  %v573_v11 = vld [vmem:[%s765_s2] ss:$0 sm:$0xff] }
   0xd   : > { %s591_s16 = sshll.u32 %s772_s12, 6  ;;  %s590_s20 = sshll.u32 %s772_s12, 4 }
   0xe   : > { %s253_s19 = scalar_lea.vmem %s764_s1, %s591_s16  ;;  %s244_s23 = scalar_lea.vmem %s763_s0, %s590_s20 }
   0xf   : > { %v662_v0 = vld [vmem:[%s253_s19 + $0x38] sm:$0xff]   ;;  %v663_v1 = vld [vmem:[%s253_s19 + $0x30] sm:$0xff]   ;;  %v664_v2 = vld [vmem:[%s253_s19 + $0x28] sm:$0xff]   ;;  %s268_s28 = scalar_lea.vmem %s766_s3, %s590_s20 }
  0x10   : > { %618 = vmatprep.subr.bf16.mxu0 %v662_v0  ;;  %v665_v3 = vld [vmem:[%s253_s19 + $0x20] sm:$0xff]   ;;  %v666_v5 = vld [vmem:[%s253_s19 + $0x18] sm:$0xff]   ;;  %v667_v6 = vld [vmem:[%s253_s19 + $0x10] sm:$0xff]  }
  0x11   : > { %619 = vmatpush3.bf16.msra.mxu0 %v662_v0  ;;  %v670_v4 = vld [vmem:[%s244_s23] sm:$0xff]   ;;  %v668_v7 = vld [vmem:[%s253_s19 + $0x8] sm:$0xff]  }
  0x12   : > { %620 = vmatprep.subr.bf16.mxu0 %v663_v1  ;;  %634 = vmatprep.mubr.bf16.mxu0 %v670_v4  ;;  %v669_v8 = vld [vmem:[%s253_s19] sm:$0xff]   ;;  %v671_v9 = vld [vmem:[%s244_s23 + $0x8] sm:$0xff]  }
  0x15   : > { %621 = vmatpush3.bf16.msra.mxu0 %v663_v1 }
  0x16   : > { %622 = vmatprep.subr.bf16.mxu0 %v664_v2 }
  0x19   : > { %623 = vmatpush3.bf16.msra.mxu0 %v664_v2 }
  0x1a   : > { %624 = vmatprep.subr.bf16.mxu0 %v665_v3 }
  0x1d   : > { %625 = vmatpush3.bf16.msra.mxu0 %v665_v3 }
  0x1e   : > { %626 = vmatprep.subr.bf16.mxu0 %v666_v5 }
  0x21   : > { %627 = vmatpush3.bf16.msra.mxu0 %v666_v5 }
  0x22   : > { %628 = vmatprep.subr.bf16.mxu0 %v667_v6 }
  0x25   : > { %629 = vmatpush3.bf16.msra.mxu0 %v667_v6 }
  0x26   : > { %630 = vmatprep.subr.bf16.mxu0 %v668_v7 }
  0x29   : > { %631 = vmatpush3.bf16.msra.mxu0 %v668_v7 }
  0x2a   : > { %632 = vmatprep.subr.bf16.mxu0 %v669_v8 }
  0x2d   : > { %633 = vmatpush3.bf16.msra.mxu0 %v669_v8 }
  0x30   : > { %635 = vmatmul.mubr.bf16.vlgmr.msra.gmra.mxu0 %v671_v9 }
  0xf0   : > { %v636_v10 = vpop.f32.mrf.mxu0 }
  0xf1   : > { %v401_v13 = vadd.f32 %v636_v10, %v573_v11 }
  0xf2   : > { %v392_v12 = vpop.f32.mrf.mxu0 }
  0xf3   : > { %v393_v15 = vadd.f32 %v573_v11, %v392_v12  ;;  %v409_v18 = vmax.f32 %v401_v13, 0.0 }
  0xf4   : > { %v637_v14 = vpop.f32.mrf.mxu0 }
  0xf5   : > { %v404_v16 = vadd.f32 %v637_v14, %v573_v11  ;;  %v407_v21 = vmax.f32 %v393_v15, 0.0 }
  0xf6   : > { %v395_v17 = vpop.f32.mrf.mxu0 }
  0xf7   : > { %v410_v19 = vmax.f32 %v404_v16, 0.0  ;;  %v396_v20 = vadd.f32 %v573_v11, %v395_v17 }
  0xf9   : > { %v605_v22 = vpack.c.bf16 %v410_v19, %v409_v18  ;;  %v408_v23 = vmax.f32 %v396_v20, 0.0 }
  0xfb   : > { %607 = vst [vmem:[%s268_s28 + $0x8] sm:$0xff] %v605_v22   ;;  %v600_v24 = vpack.c.bf16 %v408_v23, %v407_v21 }
  0xfd   : > { %601 = vst [vmem:[%s268_s28] sm:$0xff] %v600_v24  }
  0xfe PF: > { %s13_s14 = sadd.s32 1, %s694_s14   ;;  %s767_s12 = smov %s690_s13 }
  0xff   : > { %p10_p5 = scmp.ge.s32.totalorder %s13_s14, 6   ;;  %s768_s13 = smov %s770_s15 }
 0x101   :  { %12 = sbr.rel (!%p10_p5) target bundleno = 2 (0x2), region = 68 }

// kernel: pix2pix_forward.7
= control target key start
LH: loop header
LB: loop body
LE: loop exit
PB: predicated region body
PF: predicated region fallthrough
CT: control target
= control target key end

     0   :  { %s879_s12 = smov 0   ;;  %s881_s13 = smov 0   ;;  %s960_s0 = inlined_call_operand.vmem [shape: bf16[4,128,128], index: 0, kind: input, shape index: {}]   ;;  %s961_s1 = inlined_call_operand.vmem [shape: bf16[4,128,128], index: 1, kind: input, shape index: {}]   ;;  %s962_s2 = inlined_call_operand.vmem [shape: f32[1,128], index: 2, kind: input, shape index: {}]   ;;  %s963_s3 = inlined_call_operand.vmem [shape: f32[4,128,128], index: 3, kind: output, shape index: {}]  }
   0x1   :  { %s883_s14 = smov 0  }
   0x2 LB: > { %s32_s15 = sadd.s32 1, %s853_s13  ;;  %p670_p0 = scmp.ge.s32.totalorder %s857_s14, 1  ;;  %s857_s14 = sphi %s883_s14, %s13_s14   ;;  %s853_s13 = sphi %s881_s13, %s965_s13   ;;  %s849_s12 = sphi %s879_s12, %s964_s12  }
   0x3   : > { %p34_p1 = scmp.ge.s32.totalorder %s32_s15, 4  ;;  %p190_p2 = scmp.lt.s32.totalorder %s857_s14, 5 }
   0x5   : > { %s967_s15 = smov (%p34_p1, %s32_s15), 0  ;;  %p191_p3 = pnand %p670_p0, %p190_p2 }
   0x6   : > { %p237_p4 = scmp.lt.s32.totalorder (!%p191_p3), %s849_s12, 3 }
   0x7   : > { %194 = sbr.rel (%p191_p3) target bundleno = 273 (0x111), region = 32 }
   0xc   : > { %s969_s12 = smov (!%p237_p4, %s849_s12), 3  ;;  %v677_v16 = vld [vmem:[%s962_s2] ss:$0 sm:$0xff] }
   0xd   : > { %s696_s16 = sshll.u32 %s969_s12, 6  ;;  %s698_s25 = sshll.u32 %s969_s12, 7 }
   0xe   : > { %s903_s19 = scalar_lea.vmem %s961_s1, %s696_s16  ;;  %s911_s22 = scalar_lea.vmem %s960_s0, %s696_s16 }
   0xf   : > { %v787_v0 = vld [vmem:[%s903_s19 + $0x38] sm:$0xff]   ;;  %v788_v1 = vld [vmem:[%s903_s19 + $0x30] sm:$0xff]   ;;  %v789_v2 = vld [vmem:[%s903_s19 + $0x28] sm:$0xff]   ;;  %s933_s28 = scalar_lea.vmem %s963_s3, %s698_s25 }
  0x10   : > { %715 = vmatprep.subr.bf16.mxu0 %v787_v0  ;;  %747 = vmatprep.subr.bf16.mxu1 %v787_v0  ;;  %v790_v3 = vld [vmem:[%s903_s19 + $0x20] sm:$0xff]   ;;  %v791_v6 = vld [vmem:[%s903_s19 + $0x18] sm:$0xff]   ;;  %v792_v7 = vld [vmem:[%s903_s19 + $0x10] sm:$0xff]  }
  0x11   : > { %716 = vmatpush3.bf16.msra.mxu0 %v787_v0  ;;  %755 = vmatpush3.bf16.msra.mxu1 %v787_v0  ;;  %v795_v4 = vld [vmem:[%s911_s22] sm:$0xff]   ;;  %v793_v8 = vld [vmem:[%s903_s19 + $0x8] sm:$0xff]   ;;  %v799_v12 = vld [vmem:[%s911_s22 + $0x10] sm:$0xff]  }
  0x12   : > { %717 = vmatprep.subr.bf16.mxu0 %v788_v1  ;;  %748 = vmatprep.subr.bf16.mxu1 %v788_v1  ;;  %v796_v5 = vld [vmem:[%s911_s22 + $0x20] sm:$0xff]   ;;  %v797_v10 = vld [vmem:[%s911_s22 + $0x8] sm:$0xff]   ;;  %v800_v13 = vld [vmem:[%s911_s22 + $0x30] sm:$0xff]  }
  0x13   : > { %731 = vmatprep.mubr.bf16.mxu0 %v795_v4  ;;  %739 = vmatprep.mubr.bf16.mxu1 %v796_v5  ;;  %v794_v9 = vld [vmem:[%s903_s19] sm:$0xff]   ;;  %v798_v11 = vld [vmem:[%s911_s22 + $0x28] sm:$0xff]   ;;  %v801_v14 = vld [vmem:[%s911_s22 + $0x18] sm:$0xff]  }
  0x14   : > { %v802_v15 = vld [vmem:[%s911_s22 + $0x38] sm:$0xff]  }
  0x15   : > { %718 = vmatpush3.bf16.msra.mxu0 %v788_v1  ;;  %756 = vmatpush3.bf16.msra.mxu1 %v788_v1 }
  0x16   : > { %719 = vmatprep.subr.bf16.mxu0 %v789_v2  ;;  %749 = vmatprep.subr.bf16.mxu1 %v789_v2 }
  0x19   : > { %720 = vmatpush3.bf16.msra.mxu0 %v789_v2  ;;  %757 = vmatpush3.bf16.msra.mxu1 %v789_v2 }
  0x1a   : > { %721 = vmatprep.subr.bf16.mxu0 %v790_v3  ;;  %750 = vmatprep.subr.bf16.mxu1 %v790_v3 }
  0x1d   : > { %722 = vmatpush3.bf16.msra.mxu0 %v790_v3  ;;  %758 = vmatpush3.bf16.msra.mxu1 %v790_v3 }
  0x1e   : > { %723 = vmatprep.subr.bf16.mxu0 %v791_v6  ;;  %751 = vmatprep.subr.bf16.mxu1 %v791_v6 }
  0x21   : > { %724 = vmatpush3.bf16.msra.mxu0 %v791_v6  ;;  %759 = vmatpush3.bf16.msra.mxu1 %v791_v6 }
  0x22   : > { %725 = vmatprep.subr.bf16.mxu0 %v792_v7  ;;  %752 = vmatprep.subr.bf16.mxu1 %v792_v7 }
  0x25   : > { %726 = vmatpush3.bf16.msra.mxu0 %v792_v7  ;;  %760 = vmatpush3.bf16.msra.mxu1 %v792_v7 }
  0x26   : > { %727 = vmatprep.subr.bf16.mxu0 %v793_v8  ;;  %753 = vmatprep.subr.bf16.mxu1 %v793_v8 }
  0x29   : > { %728 = vmatpush3.bf16.msra.mxu0 %v793_v8  ;;  %761 = vmatpush3.bf16.msra.mxu1 %v793_v8 }
  0x2a   : > { %729 = vmatprep.subr.bf16.mxu0 %v794_v9  ;;  %754 = vmatprep.subr.bf16.mxu1 %v794_v9 }
  0x2d   : > { %730 = vmatpush3.bf16.msra.mxu0 %v794_v9  ;;  %762 = vmatpush3.bf16.msra.mxu1 %v794_v9 }
  0x30   : > { %732 = vmatmul.mubr.bf16.vlgmr.msra.gmra.mxu0 %v797_v10  ;;  %740 = vmatmul.mubr.bf16.vlgmr.msra.gmra.mxu1 %v798_v11 }
  0x31   : > { %735 = vmatprep.mubr.bf16.mxu0 %v799_v12  ;;  %743 = vmatprep.mubr.bf16.mxu1 %v800_v13 }
  0x38   : > { %736 = vmatmul.mubr.bf16.gmra.mxu0 %v801_v14  ;;  %744 = vmatmul.mubr.bf16.gmra.mxu1 %v802_v15 }
  0xf0   : > { %v733_v17 = vpop.f32.mrf.mxu0  ;;  %v741_v18 = vpop.f32.mrf.mxu1 }
  0xf1   : > { %v449_v19 = vadd.f32 %v733_v17, %v677_v16  ;;  %v481_v20 = vadd.f32 %v741_v18, %v677_v16 }
  0xf2   : > { %v440_v21 = vpop.f32.mrf.mxu0  ;;  %v472_v22 = vpop.f32.mrf.mxu1 }
  0xf3   : > { %803 = vtanh.f32 %v449_v19  ;;  %v441_v23 = vadd.f32 %v677_v16, %v440_v21  ;;  %v473_v24 = vadd.f32 %v677_v16, %v472_v22 }
  0xf4   : > { %805 = vtanh.f32 %v481_v20  ;;  %v734_v25 = vpop.f32.mrf.mxu0  ;;  %v742_v26 = vpop.f32.mrf.mxu1 }
  0xf5   : > { %807 = vtanh.f32 %v441_v23  ;;  %v452_v27 = vadd.f32 %v734_v25, %v677_v16  ;;  %v484_v28 = vadd.f32 %v742_v26, %v677_v16 }
  0xf6   : > { %809 = vtanh.f32 %v473_v24  ;;  %v443_v29 = vpop.f32.mrf.mxu0  ;;  %v475_v30 = vpop.f32.mrf.mxu1 }
  0xf7   : > { %811 = vtanh.f32 %v452_v27  ;;  %v444_v31 = vadd.f32 %v677_v16, %v443_v29  ;;  %v476_v32 = vadd.f32 %v677_v16, %v475_v30 }
  0xf8   : > { %813 = vtanh.f32 %v484_v28  ;;  %v737_v33 = vpop.f32.mrf.mxu0  ;;  %v745_v34 = vpop.f32.mrf.mxu1 }
  0xf9   : > { %815 = vtanh.f32 %v444_v31  ;;  %v465_v35 = vadd.f32 %v737_v33, %v677_v16  ;;  %v497_v36 = vadd.f32 %v745_v34, %v677_v16 }
  0xfa   : > { %817 = vtanh.f32 %v476_v32  ;;  %v456_v37 = vpop.f32.mrf.mxu0  ;;  %v488_v38 = vpop.f32.mrf.mxu1 }
  0xfb   : > { %819 = vtanh.f32 %v465_v35  ;;  %v457_v39 = vadd.f32 %v677_v16, %v456_v37  ;;  %v489_v40 = vadd.f32 %v677_v16, %v488_v38 }
  0xfc   : > { %821 = vtanh.f32 %v497_v36  ;;  %v738_v41 = vpop.f32.mrf.mxu0  ;;  %v746_v42 = vpop.f32.mrf.mxu1 }
  0xfd   : > { %823 = vtanh.f32 %v457_v39  ;;  %v468_v43 = vadd.f32 %v738_v41, %v677_v16  ;;  %v500_v44 = vadd.f32 %v746_v42, %v677_v16 }
  0xfe   : > { %825 = vtanh.f32 %v489_v40  ;;  %v459_v45 = vpop.f32.mrf.mxu0  ;;  %v491_v46 = vpop.f32.mrf.mxu1 }
  0xff   : > { %827 = vtanh.f32 %v468_v43  ;;  %v460_v47 = vadd.f32 %v677_v16, %v459_v45  ;;  %v492_v48 = vadd.f32 %v677_v16, %v491_v46 }
 0x100   : > { %v804_v49 = vpop.eup %803  ;;  %829 = vtanh.f32 %v500_v44 }
 0x101   : > { %v806_v50 = vpop.eup %805  ;;  %521 = vst [vmem:[%s933_s28 + $0x10] sm:$0xff] %v804_v49  ;;  %831 = vtanh.f32 %v460_v47 }
 0x102   : > { %v808_v51 = vpop.eup %807  ;;  %529 = vst [vmem:[%s933_s28 + $0x50] sm:$0xff] %v806_v50  ;;  %833 = vtanh.f32 %v492_v48 }
 0x103   : > { %v810_v52 = vpop.eup %809  ;;  %519 = vst [vmem:[%s933_s28] sm:$0xff] %v808_v51 }
 0x104   : > { %v812_v53 = vpop.eup %811  ;;  %527 = vst [vmem:[%s933_s28 + $0x40] sm:$0xff] %v810_v52 }
 0x105   : > { %v814_v54 = vpop.eup %813  ;;  %522 = vst [vmem:[%s933_s28 + $0x18] sm:$0xff] %v812_v53 }
 0x106   : > { %v816_v55 = vpop.eup %815  ;;  %530 = vst [vmem:[%s933_s28 + $0x58] sm:$0xff] %v814_v54 }
 0x107   : > { %v818_v56 = vpop.eup %817  ;;  %520 = vst [vmem:[%s933_s28 + $0x8] sm:$0xff] %v816_v55 }
 0x108   : > { %v820_v57 = vpop.eup %819  ;;  %528 = vst [vmem:[%s933_s28 + $0x48] sm:$0xff] %v818_v56 }
 0x109   : > { %v822_v58 = vpop.eup %821  ;;  %525 = vst [vmem:[%s933_s28 + $0x30] sm:$0xff] %v820_v57 }
 0x10a   : > { %v824_v59 = vpop.eup %823  ;;  %533 = vst [vmem:[%s933_s28 + $0x70] sm:$0xff] %v822_v58 }
 0x10b   : > { %v826_v60 = vpop.eup %825  ;;  %523 = vst [vmem:[%s933_s28 + $0x20] sm:$0xff] %v824_v59 }
 0x10c   : > { %v828_v61 = vpop.eup %827  ;;  %531 = vst [vmem:[%s933_s28 + $0x60] sm:$0xff] %v826_v60 }
 0x10d   : > { %v830_v62 = vpop.eup %829  ;;  %526 = vst [vmem:[%s933_s28 + $0x38] sm:$0xff] %v828_v61 }
 0x10e   : > { %v832_v63 = vpop.eup %831  ;;  %534 = vst [vmem:[%s933_s28 + $0x78] sm:$0xff] %v830_v62 }
 0x10f   : > { %v834_v0 = vpop.eup %833  ;;  %524 = vst [vmem:[%s933_s28 + $0x28] sm:$0xff] %v832_v63 }
 0x110   : > { %532 = vst [vmem:[%s933_s28 + $0x68] sm:$0xff] %v834_v0 }
 0x111 PF: > { %s13_s14 = sadd.s32 1, %s857_s14   ;;  %s964_s12 = smov %s853_s13 }
 0x112   : > { %p10_p5 = scmp.ge.s32.totalorder %s13_s14, 6   ;;  %s965_s13 = smov %s967_s15 }
 0x114   :  { %12 = sbr.rel (!%p10_p5) target bundleno = 2 (0x2), region = 68 }

</bundles_post_ra>
